<compile_context>
chip_gen: v7x
topology: tpu7x:2x2x1
jax: 0.10.0
libtpu: 0.0.40
codegen_flags: <defaults>
</compile_context>

<pallas_src>
import functools

import jax
import jax.numpy as jnp
from jax import lax
from jax.experimental import pallas as pl
from jax.experimental.pallas import tpu as pltpu


def _flash_self_attention_kernel(*refs, heads, head_dim, tq, tk,
                                 causal, has_mask, fast_math):
    """One grid step = (batch n, query tile qi, key tile ki)."""
    if has_mask:
        (q_ref, kv_ref, mask_ref, wt_ref, b_ref,
         out_ref, m_scr, l_scr, acc_scr) = refs
    else:
        mask_ref = None
        (q_ref, kv_ref, wt_ref, b_ref,
         out_ref, m_scr, l_scr, acc_scr) = refs

    qi = pl.program_id(1)
    ki = pl.program_id(2)

    @pl.when(ki == 0)
    def _init():
        m_scr[...] = jnp.full(m_scr.shape, -jnp.inf, dtype=m_scr.dtype)
        l_scr[...] = jnp.zeros_like(l_scr)
        acc_scr[...] = jnp.zeros_like(acc_scr)

    def _update():
        qh = q_ref[0]            # (H, Tq, Dh) pre-scaled, already compute dtype
        kvh = kv_ref[0]          # (H, Tk, Dh) -> serves as both K and V

        # energy = einsum('nqhd,nkhd->nhqk') restricted to this tile.
        s = jnp.einsum('hqd,hkd->hqk', qh, kvh,
                       preferred_element_type=jnp.float32)   # (H, Tq, Tk) f32

        if causal:
            q_ids = qi * tq + lax.broadcasted_iota(jnp.int32, (tq, tk), 0)
            k_ids = ki * tk + lax.broadcasted_iota(jnp.int32, (tq, tk), 1)
            s = jnp.where((q_ids >= k_ids)[None, :, :], s, jnp.float32(-1e20))
        elif has_mask:
            keep = mask_ref[0] != 0          # (Hm, Tq, Tk); Hm=1 broadcasts
            s = jnp.where(keep, s, jnp.float32(-1e20))

        # Online softmax over the key axis.
        m_prev = m_scr[...]                                        # (H, Tq, 1)
        m_new = jnp.maximum(m_prev, jnp.max(s, axis=-1, keepdims=True))
        alpha = jnp.exp(m_prev - m_new)
        p = jnp.exp(s - m_new)                                     # (H, Tq, Tk)
        l_scr[...] = alpha * l_scr[...] + jnp.sum(p, axis=-1, keepdims=True)
        acc_scr[...] = alpha * acc_scr[...] + jnp.einsum(
            'hqk,hkd->hqd', p.astype(kvh.dtype), kvh,
            preferred_element_type=jnp.float32)                    # (H, Tq, Dh)
        m_scr[...] = m_new

    if causal:
        # Skip key tiles entirely above the diagonal (cheap grid-step no-op).
        @pl.when(ki * tk < (qi + 1) * tq)
        def _():
            _update()
    else:
        _update()

    @pl.when(ki == pl.num_programs(2) - 1)
    def _finalize():
        if fast_math:
            attn = acc_scr[...] * pl.reciprocal(l_scr[...], approx=True)
        else:
            attn = acc_scr[...] / l_scr[...]
        # (H, Tq, Dh) -> (Tq, H*Dh) concat (once per query tile), then fc_out.
        concat = jnp.swapaxes(attn, 0, 1).reshape(tq, heads * head_dim)
        out = jnp.dot(concat.astype(wt_ref.dtype), wt_ref[...],
                      preferred_element_type=jnp.float32) + b_ref[...]
        out_ref[0] = out.astype(out_ref.dtype)


def _query_vmem_capacity():
    try:
        return int(pltpu.get_tpu_info().vmem_capacity_bytes)
    except Exception:
        return 64 * 1024 * 1024          # conservative (v7x-sized) fallback


def _pick_block(length, candidates):
    for c in candidates:
        if length >= c and length % c == 0:
            return c
    return length                        # fall back to full extent


def self_attention_forward(values, keys, query, mask, params, *,
                           heads, embedding_dim, fast_math=True,
                           causal=False, block_q=None, block_k=None):
    N, value_len, E = values.shape
    key_len, query_len = keys.shape[1], query.shape[1]
    head_dim = embedding_dim // heads
    # Reference reshapes all three from `values` using key_len; only valid
    # when the three lengths coincide.
    assert value_len == key_len == query_len and E == embedding_dim
    assert heads * head_dim == embedding_dim
    L = query_len

    vmem_cap = _query_vmem_capacity()
    # Generation-aware tile defaults: bigger query tiles on 128 MiB parts
    # (v5e/v6e), smaller on 64 MiB v7x; key tile 128 everywhere.
    q_cands = (512, 256, 128) if vmem_cap >= (100 << 20) else (256, 128)
    tq = block_q or _pick_block(L, q_cands)
    tk = block_k or _pick_block(L, (128,))
    n_q, n_k = L // tq, L // tk

    compute_dtype = jnp.bfloat16 if fast_math else jnp.float32
    inv_scale = 1.0 / float(embedding_dim) ** 0.5

    # Head split + downcast + scale-fold done ONCE in the wrapper:
    # (N, L, E) -> (N, H, L, Dh).  Q/K/V all come from `values` (ref quirk);
    # 1/sqrt(E) is folded into the Q stream.
    vh = jnp.transpose(values.reshape(N, L, heads, head_dim), (0, 2, 1, 3))
    kv_in = vh.astype(compute_dtype)
    q_in = (vh * jnp.float32(inv_scale)).astype(compute_dtype)

    wt = params["fc_out_w"].T.astype(compute_dtype)            # (E, E): x @ W.T
    b = params["fc_out_b"].reshape(1, E).astype(jnp.float32)   # tiny; keep f32

    has_mask = (mask is not None) and (not causal)

    operands = [q_in, kv_in]
    in_specs = [
        pl.BlockSpec((1, heads, tq, head_dim), lambda n, qi, ki: (n, 0, qi, 0)),
        pl.BlockSpec((1, heads, tk, head_dim), lambda n, qi, ki: (n, 0, ki, 0)),
    ]

    heads_m = 1
    if has_mask:
        mask_b = jnp.asarray(mask)
        while mask_b.ndim < 4:
            mask_b = mask_b[None]
        n_m, heads_m = mask_b.shape[0], mask_b.shape[1]
        assert n_m in (1, N) and heads_m in (1, heads)
        assert mask_b.shape[2] == L and mask_b.shape[3] == L
        mask_b = (mask_b != 0).astype(jnp.int8)
        if n_m == 1:
            mask_idx = lambda n, qi, ki: (0, 0, qi, ki)
        else:
            mask_idx = lambda n, qi, ki: (n, 0, qi, ki)
        operands.append(mask_b)
        in_specs.append(pl.BlockSpec((1, heads_m, tq, tk), mask_idx))

    operands += [wt, b]
    # NOTE: the weight/bias block index never changes; pipeline_mode=
    # pl.Buffered(1) would drop the redundant second buffer (useful for very
    # large E on v7x) but is left at the default here for portability.
    in_specs += [
        pl.BlockSpec((E, E), lambda n, qi, ki: (0, 0)),
        pl.BlockSpec((1, E), lambda n, qi, ki: (0, 0)),
    ]

    # Rough VMEM need: double-buffered tiles + weight + scratch + live f32
    # score intermediates; headroom-clamped to a fraction of physical VMEM.
    itm = jnp.dtype(compute_dtype).itemsize
    out_itm = jnp.dtype(values.dtype).itemsize
    est = (2 * heads * tq * head_dim * itm
           + 2 * heads * tk * head_dim * itm
           + (2 * heads_m * tq * tk if has_mask else 0)
           + 2 * tq * E * out_itm
           + 2 * E * E * itm + 2 * E * 4
           + heads * tq * (head_dim + 2) * 4
           + 4 * heads * tq * tk * 4)
    vmem_limit = int(min(max(2 * est, 32 << 20), int(0.85 * vmem_cap)))

    kernel = functools.partial(
        _flash_self_attention_kernel,
        heads=heads, head_dim=head_dim, tq=tq, tk=tk,
        causal=causal, has_mask=has_mask, fast_math=fast_math)

    scratch_shapes = [
        pltpu.VMEM((heads, tq, 1), jnp.float32),          # running max
        pltpu.VMEM((heads, tq, 1), jnp.float32),          # running sum
        pltpu.VMEM((heads, tq, head_dim), jnp.float32),   # output accumulator
    ]

    return pl.pallas_call(
        kernel,
        out_shape=jax.ShapeDtypeStruct((N, L, E), values.dtype),
        grid_spec=pltpu.PrefetchScalarGridSpec(
            num_scalar_prefetch=0,
            grid=(N, n_q, n_k),                  # key (reduction) axis last
            in_specs=in_specs,
            out_specs=pl.BlockSpec((1, tq, E), lambda n, qi, ki: (n, qi, 0)),
            scratch_shapes=scratch_shapes,
        ),
        compiler_params=pltpu.CompilerParams(
            dimension_semantics=("parallel", "parallel", "arbitrary"),
            vmem_limit_bytes=vmem_limit,
        ),
    )(*operands)


def _reference_forward(values, keys, query, mask, params, *, heads, embedding_dim):
    # Pure-JAX transcription of the PyTorch forward (quirks included),
    # forced to full f32 matmul precision so it is a clean reference on TPU.
    hp = jax.lax.Precision.HIGHEST
    N = query.shape[0]
    value_len, key_len, query_len = values.shape[1], keys.shape[1], query.shape[1]
    head_dim = embedding_dim // heads
    v = values.reshape(N, value_len, heads, head_dim)
    k = values.reshape(N, key_len, heads, head_dim)
    q = values.reshape(N, key_len, heads, head_dim)
    energy = jnp.einsum('nqhd,nkhd->nhqk', q, k, precision=hp)
    if mask is not None:
        energy = jnp.where(mask == 0, -1e20, energy)
    attention = jax.nn.softmax(energy / embedding_dim ** 0.5, axis=3)
    out = jnp.einsum('nhql,nlhd->nqhd', attention, v, precision=hp).reshape(
        N, query_len, heads * head_dim)
    return (jnp.einsum('nqe,fe->nqf', out, params["fc_out_w"], precision=hp)
            + params["fc_out_b"])


if __name__ == "__main__":
    N, L, E, H = 2, 8, 32, 4
    Dh = E // H

    key = jax.random.PRNGKey(0)
    k1, k2, k3, k4, k5, k6, k7, k8 = jax.random.split(key, 8)

    values = jax.random.normal(k1, (N, L, E), dtype=jnp.float32)
    keys_in = jax.random.normal(k2, (N, L, E), dtype=jnp.float32)
    query = jax.random.normal(k3, (N, L, E), dtype=jnp.float32)
    # Causal mask, broadcastable (N, 1, L, L) like typical usage.
    mask = jnp.tril(jnp.ones((L, L), jnp.int32))[None, None, :, :]
    mask = jnp.broadcast_to(mask, (N, 1, L, L))

    params = {
        # fc_out: nn.Linear(H*Dh, E) -> weight (E, E), bias (E,)
        "fc_out_w": jax.random.normal(k4, (E, E), dtype=jnp.float32) * 0.1,
        "fc_out_b": jax.random.normal(k5, (E,), dtype=jnp.float32) * 0.1,
        # Declared in __init__ but unused by forward (reference quirk).
        "values_w": jax.random.normal(k6, (Dh, Dh), dtype=jnp.float32) * 0.1,
        "keys_w": jax.random.normal(k7, (Dh, Dh), dtype=jnp.float32) * 0.1,
        "queries_w": jax.random.normal(k8, (Dh, Dh), dtype=jnp.float32) * 0.1,
    }

    # 1) explicit-mask path, strict f32
    out_exact = self_attention_forward(values, keys_in, query, mask, params,
                                       heads=H, embedding_dim=E,
                                       fast_math=False)
    # 2) explicit-mask path, fast (bf16 MXU, approx reciprocal)
    out_fast = self_attention_forward(values, keys_in, query, mask, params,
                                      heads=H, embedding_dim=E,
                                      fast_math=True)
    # 3) causal path: no materialized mask, in-kernel iota mask + tile skip
    out_causal = self_attention_forward(values, keys_in, query, None, params,
                                        heads=H, embedding_dim=E,
                                        fast_math=False, causal=True)
    jax.block_until_ready((out_exact, out_fast, out_causal))

    ref = _reference_forward(values, keys_in, query, mask, params,
                             heads=H, embedding_dim=E)
    assert out_exact.shape == (N, L, E)
    assert out_fast.shape == (N, L, E)
    assert out_causal.shape == (N, L, E)
    assert jnp.allclose(out_exact, ref, atol=2e-3, rtol=2e-3)
    assert jnp.allclose(out_causal, ref, atol=2e-3, rtol=2e-3)
    assert jnp.allclose(out_fast, ref, atol=5e-2, rtol=5e-2)

    print("KERNEL_OK")
</pallas_src>

<mosaic_0001>
module attributes {stable_mosaic.version = 11 : i64} {
  func.func @_flash_self_attention_kernel(%arg0: i32, %arg1: i32, %arg2: i32, %arg3: memref<1x4x8x8xf32, #tpu.memory_space<vmem>>, %arg4: memref<1x4x8x8xf32, #tpu.memory_space<vmem>>, %arg5: memref<1x1x8x8xi8, #tpu.memory_space<vmem>>, %arg6: memref<32x32xf32, #tpu.memory_space<vmem>>, %arg7: memref<1x32xf32, #tpu.memory_space<vmem>>, %arg8: memref<1x8x32xf32, #tpu.memory_space<vmem>>, %arg9: memref<4x8x1xf32, #tpu.memory_space<vmem>>, %arg10: memref<4x8x1xf32, #tpu.memory_space<vmem>>, %arg11: memref<4x8x8xf32, #tpu.memory_space<vmem>>) attributes {dimension_semantics = [#tpu.dimension_semantics<parallel>, #tpu.dimension_semantics<parallel>, #tpu.dimension_semantics<arbitrary>], iteration_bounds = array<i64: 2, 1, 1>, scalar_prefetch = 0 : i64, scratch_operands = 3 : i64, tpu.core_type = #tpu.core_type<tc>, window_params = [{transform_indices = @transform_0, window_bounds = array<i64: 1, 4, 8, 8>}, {transform_indices = @transform_1, window_bounds = array<i64: 1, 4, 8, 8>}, {transform_indices = @transform_2, window_bounds = array<i64: 1, 1, 8, 8>}, {pipeline_mode = #tpu.pipeline_mode<synchronous>, transform_indices = @transform_3, window_bounds = array<i64: 32, 32>}, {pipeline_mode = #tpu.pipeline_mode<synchronous>, transform_indices = @transform_4, window_bounds = array<i64: 1, 32>}, {transform_indices = @transform_5, window_bounds = array<i64: 1, 8, 32>}]} {
    %c0_i32 = arith.constant 0 : i32
    %0 = arith.cmpi eq, %arg2, %c0_i32 : i32
    %1 = arith.extui %0 : i1 to i32
    %c0_i32_0 = arith.constant 0 : i32
    %2 = arith.cmpi ne, %1, %c0_i32_0 : i32
    scf.if %2 {
      %cst_36 = arith.constant 0xFF800000 : f32
      %41 = vector.broadcast %cst_36 : f32 to vector<4x8x1xf32>
      %c0_37 = arith.constant 0 : index
      %c0_38 = arith.constant 0 : index
      %c0_39 = arith.constant 0 : index
      %42 = vector.load %arg9[%c0_37, %c0_38, %c0_39] : memref<4x8x1xf32, #tpu.memory_space<vmem>>, vector<4x8x1xf32>
      tpu.vector_store %arg9[%c0_37, %c0_38, %c0_39], %41 {strides = array<i32>} : memref<4x8x1xf32, #tpu.memory_space<vmem>>, vector<4x8x1xf32>,
      %cst_40 = arith.constant 0.000000e+00 : f32
      %43 = vector.broadcast %cst_40 : f32 to vector<4x8x1xf32>
      %c0_41 = arith.constant 0 : index
      %c0_42 = arith.constant 0 : index
      %c0_43 = arith.constant 0 : index
      %44 = vector.load %arg10[%c0_41, %c0_42, %c0_43] : memref<4x8x1xf32, #tpu.memory_space<vmem>>, vector<4x8x1xf32>
      tpu.vector_store %arg10[%c0_41, %c0_42, %c0_43], %43 {strides = array<i32>} : memref<4x8x1xf32, #tpu.memory_space<vmem>>, vector<4x8x1xf32>,
      %cst_44 = arith.constant 0.000000e+00 : f32
      %45 = vector.broadcast %cst_44 : f32 to vector<4x8x8xf32>
      %c0_45 = arith.constant 0 : index
      %c0_46 = arith.constant 0 : index
      %c0_47 = arith.constant 0 : index
      %46 = vector.load %arg11[%c0_45, %c0_46, %c0_47] : memref<4x8x8xf32, #tpu.memory_space<vmem>>, vector<4x8x8xf32>
      tpu.vector_store %arg11[%c0_45, %c0_46, %c0_47], %45 {strides = array<i32>} : memref<4x8x8xf32, #tpu.memory_space<vmem>>, vector<4x8x8xf32>,
    } else {
    }
    %c0 = arith.constant 0 : index
    %c0_1 = arith.constant 0 : index
    %c0_2 = arith.constant 0 : index
    %c0_3 = arith.constant 0 : index
    %3 = vector.load %arg3[%c0, %c0_1, %c0_2, %c0_3] : memref<1x4x8x8xf32, #tpu.memory_space<vmem>>, vector<1x4x8x8xf32>
    %4 = vector.shape_cast %3 : vector<1x4x8x8xf32> to vector<4x8x8xf32>
    %c0_4 = arith.constant 0 : index
    %c0_5 = arith.constant 0 : index
    %c0_6 = arith.constant 0 : index
    %c0_7 = arith.constant 0 : index
    %5 = vector.load %arg4[%c0_4, %c0_5, %c0_6, %c0_7] : memref<1x4x8x8xf32, #tpu.memory_space<vmem>>, vector<1x4x8x8xf32>
    %6 = vector.shape_cast %5 : vector<1x4x8x8xf32> to vector<4x8x8xf32>
    "tpu.trace_start"() <{level = 10 : i32, message = "hqd,hkd->hqk"}> : () -> ()
    %cst = arith.constant dense<0.000000e+00> : vector<4x8x8xf32>
    %7 = tpu.matmul %4, %6, %cst {dimension_numbers = #tpu.dot_dimension_numbers<[2], [2], [1], [1], [0, 0, 0, 1, 1, 1], [0], [0]>} : vector<4x8x8xf32>, vector<4x8x8xf32>, vector<4x8x8xf32> -> vector<4x8x8xf32>
    "tpu.trace_stop"() : () -> ()
    %c0_8 = arith.constant 0 : index
    %c0_9 = arith.constant 0 : index
    %c0_10 = arith.constant 0 : index
    %c0_11 = arith.constant 0 : index
    %8 = vector.load %arg5[%c0_8, %c0_9, %c0_10, %c0_11] : memref<1x1x8x8xi8, #tpu.memory_space<vmem>>, vector<1x1x8x8xi8>
    %9 = vector.shape_cast %8 : vector<1x1x8x8xi8> to vector<1x8x8xi8>
    %c0_i8 = arith.constant 0 : i8
    %10 = vector.broadcast %c0_i8 : i8 to vector<1x8x8xi8>
    %11 = arith.cmpi ne, %9, %10 : vector<1x8x8xi8>
    %cst_12 = arith.constant -1.000000e+20 : f32
    %12 = vector.shape_cast %11 : vector<1x8x8xi1> to vector<1x8x8xi1>
    %13 = vector.broadcast %12 : vector<1x8x8xi1> to vector<4x8x8xi1>
    %14 = vector.broadcast %cst_12 : f32 to vector<4x8x8xf32>
    %15 = arith.select %13, %7, %14 : vector<4x8x8xi1>, vector<4x8x8xf32>
    %c0_13 = arith.constant 0 : index
    %c0_14 = arith.constant 0 : index
    %c0_15 = arith.constant 0 : index
    %16 = vector.load %arg9[%c0_13, %c0_14, %c0_15] : memref<4x8x1xf32, #tpu.memory_space<vmem>>, vector<4x8x1xf32>
    %cst_16 = arith.constant dense<0xFF800000> : vector<4x8xf32>
    %17 = vector.multi_reduction <maximumf>, %15, %cst_16 [2] : vector<4x8x8xf32> to vector<4x8xf32>
    %18 = vector.shape_cast %17 : vector<4x8xf32> to vector<4x8x1xf32>
    %19 = arith.maximumf %16, %18 : vector<4x8x1xf32>
    %20 = arith.subf %16, %19 : vector<4x8x1xf32>
    %21 = math.exp %20 : vector<4x8x1xf32>
    %22 = vector.broadcast %19 : vector<4x8x1xf32> to vector<4x8x8xf32>
    %23 = arith.subf %15, %22 : vector<4x8x8xf32>
    %24 = math.exp %23 : vector<4x8x8xf32>
    %c0_17 = arith.constant 0 : index
    %c0_18 = arith.constant 0 : index
    %c0_19 = arith.constant 0 : index
    %25 = vector.load %arg10[%c0_17, %c0_18, %c0_19] : memref<4x8x1xf32, #tpu.memory_space<vmem>>, vector<4x8x1xf32>
    %26 = arith.mulf %21, %25 : vector<4x8x1xf32>
    %cst_20 = arith.constant dense<0.000000e+00> : vector<4x8xf32>
    %27 = vector.multi_reduction <add>, %24, %cst_20 [2] : vector<4x8x8xf32> to vector<4x8xf32>
    %28 = vector.shape_cast %27 : vector<4x8xf32> to vector<4x8x1xf32>
    %29 = arith.addf %26, %28 : vector<4x8x1xf32>
    %c0_21 = arith.constant 0 : index
    %c0_22 = arith.constant 0 : index
    %c0_23 = arith.constant 0 : index
    %30 = vector.load %arg10[%c0_21, %c0_22, %c0_23] : memref<4x8x1xf32, #tpu.memory_space<vmem>>, vector<4x8x1xf32>
    tpu.vector_store %arg10[%c0_21, %c0_22, %c0_23], %29 {strides = array<i32>} : memref<4x8x1xf32, #tpu.memory_space<vmem>>, vector<4x8x1xf32>,
    %c0_24 = arith.constant 0 : index
    %c0_25 = arith.constant 0 : index
    %c0_26 = arith.constant 0 : index
    %31 = vector.load %arg11[%c0_24, %c0_25, %c0_26] : memref<4x8x8xf32, #tpu.memory_space<vmem>>, vector<4x8x8xf32>
    %32 = vector.broadcast %21 : vector<4x8x1xf32> to vector<4x8x8xf32>
    %33 = arith.mulf %32, %31 : vector<4x8x8xf32>
    "tpu.trace_start"() <{level = 10 : i32, message = "hqk,hkd->hqd"}> : () -> ()
    %cst_27 = arith.constant dense<0.000000e+00> : vector<4x8x8xf32>
    %34 = tpu.matmul %24, %6, %cst_27 {dimension_numbers = #tpu.dot_dimension_numbers<[2], [1], [1], [2], [0, 0, 0, 1, 1, 2], [0], [0]>} : vector<4x8x8xf32>, vector<4x8x8xf32>, vector<4x8x8xf32> -> vector<4x8x8xf32>
    "tpu.trace_stop"() : () -> ()
    %35 = arith.addf %33, %34 : vector<4x8x8xf32>
    %c0_28 = arith.constant 0 : index
    %c0_29 = arith.constant 0 : index
    %c0_30 = arith.constant 0 : index
    %36 = vector.load %arg11[%c0_28, %c0_29, %c0_30] : memref<4x8x8xf32, #tpu.memory_space<vmem>>, vector<4x8x8xf32>
    tpu.vector_store %arg11[%c0_28, %c0_29, %c0_30], %35 {strides = array<i32>} : memref<4x8x8xf32, #tpu.memory_space<vmem>>, vector<4x8x8xf32>,
    %c0_31 = arith.constant 0 : index
    %c0_32 = arith.constant 0 : index
    %c0_33 = arith.constant 0 : index
    %37 = vector.load %arg9[%c0_31, %c0_32, %c0_33] : memref<4x8x1xf32, #tpu.memory_space<vmem>>, vector<4x8x1xf32>
    tpu.vector_store %arg9[%c0_31, %c0_32, %c0_33], %19 {strides = array<i32>} : memref<4x8x1xf32, #tpu.memory_space<vmem>>, vector<4x8x1xf32>,
    %c0_i32_34 = arith.constant 0 : i32
    %38 = arith.cmpi eq, %arg2, %c0_i32_34 : i32
    %39 = arith.extui %38 : i1 to i32
    %c0_i32_35 = arith.constant 0 : i32
    %40 = arith.cmpi ne, %39, %c0_i32_35 : i32
    scf.if %40 {
      %c0_36 = arith.constant 0 : index
      %c0_37 = arith.constant 0 : index
      %c0_38 = arith.constant 0 : index
      %41 = vector.load %arg11[%c0_36, %c0_37, %c0_38] : memref<4x8x8xf32, #tpu.memory_space<vmem>>, vector<4x8x8xf32>
      %c0_39 = arith.constant 0 : index
      %c0_40 = arith.constant 0 : index
      %c0_41 = arith.constant 0 : index
      %42 = vector.load %arg10[%c0_39, %c0_40, %c0_41] : memref<4x8x1xf32, #tpu.memory_space<vmem>>, vector<4x8x1xf32>
      %43 = vector.broadcast %42 : vector<4x8x1xf32> to vector<4x8x8xf32>
      %44 = arith.divf %41, %43 : vector<4x8x8xf32>
      %45 = tpu.transpose %44, [1, 0, 2] : vector<4x8x8xf32> -> vector<8x4x8xf32>
      %46 = vector.shape_cast %45 : vector<8x4x8xf32> to vector<8x32xf32>
      %c0_42 = arith.constant 0 : index
      %c0_43 = arith.constant 0 : index
      %47 = vector.load %arg6[%c0_42, %c0_43] : memref<32x32xf32, #tpu.memory_space<vmem>>, vector<32x32xf32>
      %cst_44 = arith.constant dense<0.000000e+00> : vector<8x32xf32>
      %48 = tpu.matmul %46, %47, %cst_44 {dimension_numbers = #tpu.dot_dimension_numbers<[1], [0], [0], [1], [0, 0, 1, 1], [], []>} : vector<8x32xf32>, vector<32x32xf32>, vector<8x32xf32> -> vector<8x32xf32>
      %c0_45 = arith.constant 0 : index
      %c0_46 = arith.constant 0 : index
      %49 = vector.load %arg7[%c0_45, %c0_46] : memref<1x32xf32, #tpu.memory_space<vmem>>, vector<1x32xf32>
      %50 = vector.broadcast %49 : vector<1x32xf32> to vector<8x32xf32>
      %51 = arith.addf %48, %50 : vector<8x32xf32>
      %c0_47 = arith.constant 0 : index
      %c0_48 = arith.constant 0 : index
      %c0_49 = arith.constant 0 : index
      %52 = vector.load %arg8[%c0_47, %c0_48, %c0_49] : memref<1x8x32xf32, #tpu.memory_space<vmem>>, vector<1x8x32xf32>
      %53 = vector.shape_cast %52 : vector<1x8x32xf32> to vector<8x32xf32>
      %54 = vector.shape_cast %51 : vector<8x32xf32> to vector<1x8x32xf32>
      tpu.vector_store %arg8[%c0_47, %c0_48, %c0_49], %54 {strides = array<i32>} : memref<1x8x32xf32, #tpu.memory_space<vmem>>, vector<1x8x32xf32>,
    } else {
    }
    return
  }
  func.func @transform_0(%arg0: i32, %arg1: i32, %arg2: i32) -> (i32, i32, i32, i32) {
    %c0_i32 = arith.constant 0 : i32
    %c0_i32_0 = arith.constant 0 : i32
    %c0_i32_1 = arith.constant 0 : i32
    return %arg0, %c0_i32, %arg1, %c0_i32_0 : i32, i32, i32, i32
  }
  func.func @transform_1(%arg0: i32, %arg1: i32, %arg2: i32) -> (i32, i32, i32, i32) {
    %c0_i32 = arith.constant 0 : i32
    %c0_i32_0 = arith.constant 0 : i32
    %c0_i32_1 = arith.constant 0 : i32
    return %arg0, %c0_i32, %arg2, %c0_i32_0 : i32, i32, i32, i32
  }
  func.func @transform_2(%arg0: i32, %arg1: i32, %arg2: i32) -> (i32, i32, i32, i32) {
    %c0_i32 = arith.constant 0 : i32
    %c0_i32_0 = arith.constant 0 : i32
    return %arg0, %c0_i32, %arg1, %arg2 : i32, i32, i32, i32
  }
  func.func @transform_3(%arg0: i32, %arg1: i32, %arg2: i32) -> (i32, i32) {
    %c0_i32 = arith.constant 0 : i32
    %c0_i32_0 = arith.constant 0 : i32
    %c0_i32_1 = arith.constant 0 : i32
    return %c0_i32, %c0_i32_0 : i32, i32
  }
  func.func @transform_4(%arg0: i32, %arg1: i32, %arg2: i32) -> (i32, i32) {
    %c0_i32 = arith.constant 0 : i32
    %c0_i32_0 = arith.constant 0 : i32
    %c0_i32_1 = arith.constant 0 : i32
    return %c0_i32, %c0_i32_0 : i32, i32
  }
  func.func @transform_5(%arg0: i32, %arg1: i32, %arg2: i32) -> (i32, i32, i32) {
    %c0_i32 = arith.constant 0 : i32
    %c0_i32_0 = arith.constant 0 : i32
    return %arg0, %arg1, %c0_i32 : i32, i32, i32
  }
}

</mosaic_0001>

<bundles_post_ra>
// kernel: tpu_custom_call.1
= control target key start
LH: loop header
LB: loop body
LE: loop exit
PB: predicated region body
PF: predicated region fallthrough
CT: control target
= control target key end

     0   :  { %s2408_s0 = inlined_call_operand.hbm [shape: f32[2,4,8,8], index: 0, kind: input, shape index: {}]   ;;  %s2409_s1 = inlined_call_operand.hbm [shape: f32[2,4,8,8], index: 1, kind: input, shape index: {}]   ;;  %s2410_s2 = inlined_call_operand.vmem [shape: s8[2,1,8,8], index: 2, kind: input, shape index: {}]   ;;  %s2411_s3 = inlined_call_operand.hbm [shape: f32[32,32], index: 3, kind: input, shape index: {}]   ;;  %s2412_s4 = inlined_call_operand.vmem [shape: f32[1,32], index: 4, kind: input, shape index: {}]   ;;  %s2413_s5 = inlined_call_operand.hbm [shape: f32[2,8,32], index: 5, kind: output, shape index: {}]  }
   0x1   :  { %2423 = sst [smem:[#allocation18_spill]] %s2408_s0 }
   0x2   :  { %2424 = sst [smem:[#allocation19_spill]] %s2411_s3 }
   0x3   :  { %10 = vsyncpa [#allocation6], 0 }
   0x4   :  { %12 = vsyncpa [#allocation6 + $0x1], 0 }
   0x5   :  { %13 = vsyncpa [#allocation9], 0 }
   0x6   :  { %15 = vsyncpa [#allocation9 + $0x1], 0 }
   0x7   :  { %16 = vsyncpa [#allocation7], 0 }
   0x8   :  { %18 = vsyncpa [#allocation7 + $0x1], 0  ;;  %s2020_s18 = smov 0   ;;  %s2022_s19 = smov 0  }
   0x9   :  { %s2024_s20 = smov 0   ;;  %s2026_s21 = smov 0  }
   0xa   :  { %s2028_s22 = smov 0   ;;  %s2030_s23 = smov 0  }
   0xb LB: > { %2425 = sst [smem:[#allocation16_spill]] %s1968_s22  ;;  %s2051_s24 = sadd.s32 4294967295, %s1972_s23   ;;  %s1972_s23 = sphi %s2030_s23, %s24_s23   ;;  %s1968_s22 = sphi %s2028_s22, %s2448_s22   ;;  %s1964_s21 = sphi %s2026_s21, %s2447_s21   ;;  %s1960_s20 = sphi %s2024_s20, %s2451_s20   ;;  %s1956_s19 = sphi %s2022_s19, %s2450_s19   ;;  %s1952_s18 = sphi %s2020_s18, %s2449_s18  }
   0xc   : > { %s1562_s25 = sadd.s32 4294967294, %s1972_s23   ;;  %p65_p0 = scmp.ne.s32.totalorder %s1956_s19, %s1952_s18 }
   0xd   : > { %p2414_p1 = scmp.eq.s32.totalorder %s2051_s24, 0  ;;  %p197_p3 = scmp.eq.s32.totalorder %s1562_s25, 1 }
   0xe   : > { %p1563_p5 = scmp.ge.s32.totalorder %s1972_s23, 1  ;;  %p204_p7 = scmp.lt.s32.totalorder %s1972_s23, 3 }
   0xf   : > { %p2060_p4 = por %p2414_p1, %p65_p0  ;;  %p2065_p6 = por %p197_p3, %p65_p0 }
  0x10   : > { %p2070_p8 = pnand %p1563_p5, %p204_p7  ;;  %s1974_s29 = smov [#allocation10]  }
  0x11   : > { %s2426_s26 = scalar_select %p2060_p4, 1, 0 }
  0x12   : > { %s2427_s27 = scalar_select %p2065_p6, 1, 0 }
  0x13   : > { %s2428_s28 = scalar_select %p2070_p8, 1, 0 }
  0x14   : > { %s216_s30 = sshll.u32 %s1974_s29, 4  ;;  %p1688_p9 = pneg %p2070_p8  ;;  %s217_s30 = int_to_ptr.vmem [resolvable:$true] %s216_s30 }
  0x15   : > { %s43_s7 = sadd.s32 1, %s1968_s22  ;;  %s2430_s3 = sld [smem:[#allocation19_spill]] }
  0x16   : > { %p2079_p11 = pnand %p1688_p9, %p2414_p1 }
  0x18   : > { %p1796_p13 = pneg %p2079_p11 }
  0x1b   : > { %s1794_s10 = scalar_lea.hbm %s2430_s3, 512 }
  0x1c   : > { %p1795_p12 = scmp.ne.s32.totalorder %s2430_s3, %s1794_s10  ;;  %p1801_p5 = scmp.lt.u32.totalorder %s1794_s10, %s2430_s3 }
  0x1e   : > { %p1797_p0 = pnand %p1796_p13, %p1795_p12 }
  0x20   : > { %p1798_p3 = pneg %p1797_p0 }
  0x22   : > { %p1803_p7 = pnand %p1801_p5, %p1798_p3 }
  0x24   : > { %1806 = shalt.err (!%p1803_p7)
}
  0x25   : > { %s1807_s15 = scalar_lea.vmem %s217_s30, 512  ;;  %p1815_p2 = scmp.lt.s32.totalorder %s217_s30, %s217_s30 }
  0x26   : > { %p1808_p9 = scmp.ne.s32.totalorder %s217_s30, %s1807_s15  ;;  %p1816_p6 = scmp.lt.s32.totalorder %s1807_s15, %s1807_s15 }
  0x28   : > { %p1810_p10 = pnand %p1808_p9, %p1796_p13  ;;  %p1817_p4 = por %p1816_p6, %p1815_p2 }
  0x2a   : > { %p1811_p1 = pneg %p1810_p10 }
  0x2c   : > { %p1818_p8 = pnand %p1817_p4, %p1811_p1 }
  0x2e   : > { %1821 = shalt.err (!%p1818_p8)
}
  0x2f   : > { %s2417_s16 = smov 128   ;;  %s2419_s17 = smov 8  }
  0x30   : > { %1691 = dma.hbm_to_vmem [thread:$0]  (!%p2079_p11), %s2430_s3, 512, %s217_s30, [#allocation9], %s2417_s16, %s2417_s16, %s2419_s17  }
  0x31   : > { %p45_p1 = scmp.ge.s32.totalorder %s43_s7, 2  ;;  %s52_s8 = sadd.s32 1, %s1960_s20 }
  0x32   : > { %p59_p2 = scmp.ne.s32.totalorder %s1960_s20, %s1956_s19  ;;  %p60_p4 = scmp.eq.s32.totalorder %s1972_s23, 0 }
  0x33   : > { %s2453_s7 = smov (%p45_p1, %s43_s7), 0  ;;  %p2433_p8 = scmp.eq.s32.totalorder %s2051_s24, 1 }
  0x34   : > { %2431 = sst [smem:[#allocation17_spill]] %s2453_s7  ;;  %p2109_p6 = por %p60_p4, %p59_p2 }
  0x35   : > { %p2115_p10 = por %p2433_p8, %p59_p2  ;;  %s47_s10 = ssub.s32 %s1968_s22, %s2453_s7 }
  0x36   : > { %p1704_p12 = scmp.lt.s32.totalorder %s1972_s23, 2  ;;  %p50_p11 = scmp.eq.s32.totalorder %s47_s10, 0 }
  0x37   : > { %s233_s30 = sand.u32 1, %s1960_s20   ;;  %s1598_s13 = sshll.u32 %s1968_s22, 9 }
  0x38   : > { %s1566_s11 = sshll.u32 %s233_s30, 5  ;;  %s2435_s0 = sld [smem:[#allocation18_spill]] }
  0x39   : > { %s2124_s12 = scalar_select %p50_p11, %s1960_s20, %s52_s8  }
  0x3a   : > { %s237_s29 = scalar_lea.vmem [#allocation5], %s1566_s11  ;;  %p2136_p13 = pnand %p1704_p12, %p2109_p6 }
  0x3b   : > { %s245_s16 = sshll.u32 %s237_s29, 4  ;;  %s2143_s14 = scalar_lea.hbm %s2409_s1, %s1598_s13  ;;  %s2132_s16 = int_to_ptr.vmem [resolvable:$true] %s245_s16 }
  0x3c   : > { %s259_s15 = scalar_lea.vmem [#allocation8], %s1566_s11  ;;  %s2147_s7 = scalar_lea.sflag [#allocation6], %s233_s30 }
  0x3d   : > { %s2145_s3 = sshll.u32 %s259_s15, 4  ;;  %p1824_p3 = pneg %p2136_p13  ;;  %s2179_s3 = int_to_ptr.vmem [resolvable:$true] %s2145_s3 }
  0x3e   : > { %s2130_s25 = scalar_lea.hbm %s2435_s0, %s1598_s13  ;;  %s1827_s17 = scalar_lea.hbm %s2435_s0, 1024 }
  0x3f   : > { %s1822_s29 = scalar_lea.hbm %s2130_s25, 512  ;;  %p1828_p9 = scmp.lt.u32.totalorder %s2130_s25, %s2435_s0 }
  0x40   : > { %p1823_p0 = scmp.ne.s32.totalorder %s2130_s25, %s1822_s29  ;;  %p1829_p1 = scmp.lt.u32.totalorder %s1827_s17, %s1822_s29 }
  0x41   : > { %p1831_p4 = scmp.lt.u32.totalorder %s1822_s29, %s2130_s25 }
  0x42   : > { %p1825_p5 = pnand %p1824_p3, %p1823_p0  ;;  %p1830_p2 = por %p1829_p1, %p1828_p9 }
  0x44   : > { %p1826_p7 = pneg %p1825_p5  ;;  %p1832_p6 = por %p1831_p4, %p1830_p2 }
  0x46   : > { %p1833_p8 = pnand %p1832_p6, %p1826_p7 }
  0x48   : > { %1836 = shalt.err (!%p1833_p8)
}
  0x49   : > { %s1837_s30 = scalar_lea.vmem %s2132_s16, 512  ;;  %s1977_s22 = smov [#allocation5]  }
  0x4a   : > { %p1838_p12 = scmp.ne.s32.totalorder %s2132_s16, %s1837_s30  ;;  %s1842_s11 = sshll.u32 %s1977_s22, 4  ;;  %s1843_s11 = int_to_ptr.vmem [resolvable:$false] %s1842_s11 }
  0x4b   : > { %s1844_s15 = scalar_lea.vmem %s1843_s11, 1024  ;;  %p1845_p5 = scmp.lt.s32.totalorder %s2132_s16, %s1843_s11 }
  0x4c   : > { %p1840_p11 = pnand %p1838_p12, %p1824_p3  ;;  %p1846_p9 = scmp.lt.s32.totalorder %s1844_s15, %s1837_s30 }
  0x4e   : > { %p1841_p0 = pneg %p1840_p11  ;;  %p1847_p1 = por %p1846_p9, %p1845_p5 }
  0x50   : > { %p1848_p2 = pnand %p1847_p1, %p1841_p0 }
  0x52   : > { %1851 = shalt.err (!%p1848_p2)
}
  0x53   : > { %s2437_s29 = smov 8   ;;  %s2438_s9 = smov 128  }
  0x54   : > { %1695 = dma.hbm_to_vmem [thread:$0]  (!%p2136_p13), %s2130_s25, 512, %s2132_s16, %s2147_s7, %s2438_s9, %s2438_s9, %s2437_s29  }
  0x55   : > { %s255_s17 = sand.u32 1, %s1972_s23   ;;  %s1852_s13 = scalar_lea.hbm %s2143_s14, 512 }
  0x56   : > { %s2182_s8 = scalar_lea.sflag [#allocation9], %s255_s17  ;;  %p1853_p7 = scmp.ne.s32.totalorder %s2143_s14, %s1852_s13 }
  0x57   : > { %s1857_s11 = scalar_lea.hbm %s2409_s1, 1024  ;;  %p1858_p8 = scmp.lt.u32.totalorder %s2143_s14, %s2409_s1 }
  0x58   : > { %p1855_p4 = pnand %p1853_p7, %p1824_p3  ;;  %p1859_p12 = scmp.lt.u32.totalorder %s1857_s11, %s1852_s13 }
  0x59   : > { %p1861_p0 = scmp.lt.u32.totalorder %s1852_s13, %s2143_s14 }
  0x5a   : > { %p1856_p6 = pneg %p1855_p4  ;;  %p1860_p11 = por %p1859_p12, %p1858_p8 }
  0x5c   : > { %p1862_p5 = por %p1861_p0, %p1860_p11 }
  0x5e   : > { %p1863_p9 = pnand %p1862_p5, %p1856_p6 }
  0x60   : > { %1866 = shalt.err (!%p1863_p9)
}
  0x61   : > { %s1867_s7 = scalar_lea.vmem %s2179_s3, 512  ;;  %s1978_s16 = smov [#allocation8]  }
  0x62   : > { %p1868_p1 = scmp.ne.s32.totalorder %s2179_s3, %s1867_s7  ;;  %s1872_s25 = sshll.u32 %s1978_s16, 4  ;;  %s1873_s25 = int_to_ptr.vmem [resolvable:$false] %s1872_s25 }
  0x63   : > { %s1874_s0 = scalar_lea.vmem %s1873_s25, 1024  ;;  %p1875_p4 = scmp.lt.s32.totalorder %s2179_s3, %s1873_s25 }
  0x64   : > { %p1870_p2 = pnand %p1868_p1, %p1824_p3  ;;  %p1876_p8 = scmp.lt.s32.totalorder %s1874_s0, %s1867_s7 }
  0x66   : > { %p1871_p7 = pneg %p1870_p2  ;;  %p1877_p12 = por %p1876_p8, %p1875_p4 }
  0x68   : > { %p1878_p11 = pnand %p1877_p12, %p1871_p7 }
  0x6a   : > { %1881 = shalt.err (!%p1878_p11)
}
  0x6b   : > { %1698 = dma.hbm_to_vmem [thread:$0]  (!%p2136_p13), %s2143_s14, 512, %s2179_s3, %s2182_s8, %s2438_s9, %s2438_s9, %s2437_s29  }
  0x6c   : > { %p2439_p3 = scmp.ne.s32.totalorder %s2428_s28, 0 }
  0x6d   : > { %s2214_s17 = sand.u32 (!%p2439_p3), 1, %s1956_s19   ;;  %p2440_p6 = scmp.ne.s32.totalorder (!%p2439_p3), %s2426_s26, 0 }
  0x6e   : > { %292 = sbr.rel (%p2439_p3) target bundleno = 1299 (0x513), region = 40  ;;  %s1573_s13 = sshll.u32 (!%p2439_p3), %s2214_s17, 5 }
  0x6f   : > { %s295_s30 = scalar_lea.sflag (!%p2439_p3), [#allocation6], %s2214_s17  ;;  %s2218_s22 = scalar_lea.vmem (!%p2439_p3), [#allocation5], %s1573_s13 }
  0x75   : > { %1935 = dma.done.wait (%p2440_p6), %s295_s30, 512  }
  0x76   : > { %1937 = vsyncadd (%p2440_p6), %s295_s30, 4294966784  ;;  %s303_s3 = sand.u32 1, %s2051_s24   ;;  %s2225_s10 = scalar_lea.vmem [#allocation8], %s1573_s13 }
  0x77   : > { %s304_s28 = scalar_lea.sflag [#allocation9], %s303_s3 }
  0x78   : > { %1939 = dma.done.wait (%p2440_p6), %s304_s28, 512  }
  0x79   : > { %1941 = vsyncadd (%p2440_p6), %s304_s28, 4294966784  ;;  %p2441_p13 = scmp.eq.s32.totalorder %s2051_s24, 0 }
  0x7b   : > { %1943 = dma.done.wait (%p2441_p13), [#allocation9], 512   ;;  %p2442_p0 = pmov %p2441_p13 }
  0x7c   : > { %vm378_vm0 = vcmask 64512   ;;  %v1979_v0 = vmov 0.0   ;;  %vm1980_vm1 = vmmov 0   ;;  %v387_v1 = vld [vmem:[%s2225_s10] sm:$0xff]  ;;  %v2251_v2 = vld [vmem:[%s2225_s10 + $0x10] sm:$0xff]  ;;  %v388_v5 = vld [vmem:[%s2225_s10 + $0x8] sm:$0xff] }
  0x7d   : > { %1945 = vsyncadd (%p2442_p0), [#allocation9], 4294966784  ;;  %1621 = vmatprep.subr.mxu1 %v1979_v0  ;;  %1631 = vmatprep.subr.mxu0 %v1979_v0  ;;  %379 = vst.msk [vmem:[#allocation4] sm:$0xff] %vm378_vm0, %v1979_v0  ;;  %v383_v3 = vld [vmem:[%s2218_s22] sm:$0xff]  ;;  %v385_v4 = vld [vmem:[%s2218_s22 + $0x10] sm:$0xff]  ;;  %v1981_v9 = vmov 0  }
  0x7e   : > { %380 = vst.msk [vmem:[#allocation4 + $0x8] sm:$0xff] %vm378_vm0, %v1979_v0  ;;  %381 = vst.msk [vmem:[#allocation4 + $0x10] sm:$0xff] %vm378_vm0, %v1979_v0  ;;  %1623 = vmatprep.mubr.msk.f32.mxu1 %vm1980_vm1, %v1979_v0  ;;  %1633 = vmatprep.mubr.msk.f32.mxu0 %vm1980_vm1, %v1979_v0  ;;  %v384_v6 = vld [vmem:[%s2218_s22 + $0x8] sm:$0xff]  ;;  %v2269_v7 = vld [vmem:[%s2225_s10 + $0x18] sm:$0xff]  ;;  %vm369_vm2 = vcmask 7168   ;;  %v1982_v10 = vmov -inf  }
  0x7f   : > { %382 = vst.msk [vmem:[#allocation4 + $0x18] sm:$0xff] %vm378_vm0, %v1979_v0  ;;  %1622 = vmatpush3.xpose.msk.msra.mxu1 %vm378_vm0, %v387_v1  ;;  %1632 = vmatpush3.xpose.msk.msra.mxu0 %vm378_vm0, %v2251_v2  ;;  %v386_v8 = vld [vmem:[%s2218_s22 + $0x18] sm:$0xff]  ;;  %p353_p5 = scmp.lt.s32.totalorder %s1964_s21, 1  ;;  %s1986_s8 = smov 16   ;;  %vm1320_vm5 = vcmask 130048   ;;  %vm1322_vm6 = vcmask 195584  }
  0x80   : > { %1626 = vmatprep.subr.mxu1 %v1979_v0  ;;  %1641 = vmatprep.subr.mxu0 %v1979_v0  ;;  %372 = vst.msk [vmem:[#allocation2 + $0x10] sm:$0xff] %vm369_vm2, %v1982_v10  ;;  %370 = vst.msk [vmem:[#allocation2] sm:$0xff] %vm369_vm2, %v1982_v10  ;;  %s1987_s11 = smov 8   ;;  %s1988_s15 = smov 24   ;;  %vm1335_vm7 = vcmask 261120  }
  0x81   : > { %1769 = vset.pattern.permute.xlu1 %v1981_v9  ;;  %1768 = vset.pattern.permute.xlu0 %v1981_v9  ;;  %371 = vst.msk [vmem:[#allocation2 + $0x8] sm:$0xff] %vm369_vm2, %v1982_v10  ;;  %373 = vst.msk [vmem:[#allocation2 + $0x18] sm:$0xff] %vm369_vm2, %v1982_v10  ;;  %s354_s24 = scalar_select %p353_p5, %s1964_s21, 1 }
  0x82   : > { %1624 = vmatmul.mubr.msk.f32.vlgmr.msra.gmra.mrb[0].mxu1 %vm378_vm0, %v383_v3  ;;  %1634 = vmatmul.mubr.msk.f32.vlgmr.msra.gmra.mrb[0].mxu0 %vm378_vm0, %v385_v4  ;;  %374 = vst.msk [vmem:[#allocation3] sm:$0xff] %vm369_vm2, %v1979_v0  ;;  %375 = vst.msk [vmem:[#allocation3 + $0x8] sm:$0xff] %vm369_vm2, %v1979_v0  ;;  %s1576_s7 = sshll.u32 %s2214_s17, 3  ;;  %s1595_s0 = sshll.u32 %s1964_s21, 7 }
  0x83   : > { %1627 = vmatpush3.xpose.msk.msra.mxu1 %vm378_vm0, %v388_v5  ;;  %1628 = vmatprep.mubr.msk.f32.mxu1 %vm1980_vm1, %v1979_v0  ;;  %376 = vst.msk [vmem:[#allocation3 + $0x10] sm:$0xff] %vm369_vm2, %v1979_v0  ;;  %377 = vst.msk [vmem:[#allocation3 + $0x18] sm:$0xff] %vm369_vm2, %v1979_v0  ;;  %s1577_s26 = sshll.u32 %s354_s24, 1  ;;  %s352_s13 = scalar_lea.vmem [#allocation11], %s1576_s7 }
  0x84   : > { %1636 = vmatprep.subr.mxu1 %v1979_v0  ;;  %1642 = vmatpush3.msra.mxu0 %v387_v1  ;;  %s362_s9 = scalar_lea.vmem %s2410_s2, %s1577_s26  ;;  %s1425_s30 = sshll.u32 %s352_s13, 4  ;;  %s2361_s30 = int_to_ptr.vmem [resolvable:$true] %s1425_s30 }
  0x85   : > { %1643 = vmatprep.mubr.msk.f32.mxu0 %vm1980_vm1, %v1979_v0  ;;  %1651 = vmatprep.subr.mxu0 %v1979_v0  ;;  %v696_v11 = vld [vmem:[%s362_s9] sm:$0x3]  ;;  %s2359_s28 = scalar_lea.hbm %s2413_s5, %s1595_s0  ;;  %s1411_s10 = scalar_lea.sflag [#allocation7], %s2214_s17 }
  0x86   : > { %1629 = vmatmul.mubr.msk.f32.vlgmr.msra.gmra.mrb[2].mxu1 %vm378_vm0, %v384_v6  ;;  %vm697_vm3 = vnez %v696_v11  ;;  %s1882_s24 = scalar_lea.vmem %s2361_s30, 128  ;;  %s1989_s21 = smov [#allocation11]  }
  0x87   : > { %1637 = vmatpush3.xpose.msk.msra.mxu1 %vm378_vm0, %v2269_v7  ;;  %1638 = vmatprep.mubr.msk.f32.mxu1 %vm1980_vm1, %v1979_v0  ;;  %v698_v12 = vsel %vm697_vm3, 16843009, %v1981_v9  ;;  %v2318_v31 = vld [vmem:[#allocation2 + $0x10] sm:$0xff]  ;;  %v707_v32 = vld [vmem:[#allocation2] sm:$0xff]  ;;  %p1883_p9 = scmp.ne.s32.totalorder %s2361_s30, %s1882_s24  ;;  %s1886_s26 = sshll.u32 %s1989_s21, 4  ;;  %s1887_s26 = int_to_ptr.vmem [resolvable:$false] %s1886_s26 }
  0x88   : > { %1646 = vmatprep.subr.mxu1 %v1979_v0  ;;  %v699_v13 = vunpack.c.0.s8 %v698_v12  ;;  %v708_v37 = vld [vmem:[#allocation2 + $0x8] sm:$0xff]  ;;  %v710_v42 = vld [vmem:[#allocation2 + $0x18] sm:$0xff]  ;;  %s1888_s14 = scalar_lea.vmem %s1887_s26, 256  ;;  %p1889_p7 = scmp.lt.s32.totalorder %s2361_s30, %s1887_s26 }
  0x89   : > { %v771_v11 = vld [vmem:[#allocation3] sm:$0xff]  ;;  %p1884_p1 = pnand %p1883_p9, %p2115_p10  ;;  %p1890_p4 = scmp.lt.s32.totalorder %s1888_s14, %s1882_s24 }
  0x8a   : > { %1639 = vmatmul.mubr.msk.f32.vlgmr.msra.gmra.mrb[4].mxu1 %vm378_vm0, %v386_v8  ;;  %vm2302_vm4 = vcmp.ne.s32.totalorder %v699_v13, 0  ;;  %v772_v13 = vld [vmem:[#allocation3 + $0x8] sm:$0xff] }
  0x8b   : > { %1647 = vmatpush3.msra.mxu1 %v388_v5  ;;  %1648 = vmatprep.mubr.msk.f32.mxu1 %vm1980_vm1, %v1979_v0  ;;  %p1885_p2 = pneg %p1884_p1  ;;  %p1891_p8 = por %p1890_p4, %p1889_p7 }
  0x8c   : > { %1656 = vmatprep.subr.mxu1 %v1979_v0 }
  0x8d   : > { %p1892_p12 = pnand %p1891_p8, %p1885_p2 }
 0x155   : > { %v464_v15 = vpop.f32.mrb[0].mxu1  ;;  %v616_v16 = vpop.f32.mrb[0].mxu0 }
 0x156   : > { %v703_v17 = vsel %vm2302_vm4, %v464_v15, -1e+20  ;;  %v705_v18 = vsel %vm2302_vm4, %v616_v16, -1e+20  ;;  %v1625_v19 = vpop.f32.mrb[1].mxu1  ;;  %v1635_v20 = vpop.f32.mrb[1].mxu0 }
 0x157   : > { %v717_v21 = vsel %vm378_vm0, %v705_v18, -inf  ;;  %v711_v22 = vsel %vm378_vm0, %v703_v17, -inf  ;;  %v773_v15 = vld [vmem:[#allocation3 + $0x10] sm:$0xff] }
 0x158   : > { %718 = vmax.xlane.f32.xlu1 %v717_v21  ;;  %712 = vmax.xlane.f32.xlu0 %v711_v22  ;;  %v774_v22 = vld [vmem:[#allocation3 + $0x18] sm:$0xff] }
 0x159   : > { %v540_v23 = vpop.f32.mrb[2].mxu1 }
 0x15a   : > { %v704_v24 = vsel %vm2302_vm4, %v540_v23, -1e+20  ;;  %v1630_v25 = vpop.f32.mrb[3].mxu1 }
 0x15b   : > { %v714_v26 = vsel %vm378_vm0, %v704_v24, -inf }
 0x15c   : > { %715 = vmax.xlane.f32.xlu0 %v714_v26 }
 0x15d   : > { %v692_v27 = vpop.f32.mrb[4].mxu1 }
 0x15e   : > { %v706_v28 = vsel %vm2302_vm4, %v692_v27, -1e+20  ;;  %v1640_v29 = vpop.f32.mrb[5].mxu1 }
 0x15f   : > { %v720_v30 = vsel %vm378_vm0, %v706_v28, -inf }
 0x160   : > { %721 = vmax.xlane.f32.xlu1 %v720_v30 }
 0x1e5   : > { %v719_v33 = vpop.xlane.xlu1 %718  ;;  %v713_v34 = vpop.xlane.xlu0 %712 }
 0x1e6   : > { %v725_v35 = vmax.f32 %v2318_v31, %v719_v33  ;;  %v723_v36 = vmax.f32 %v707_v32, %v713_v34  ;;  %v1983_v33 = vmov 0.0|0.0  }
 0x1e8   : > { %v729_v38 = vsub.f32 %v2318_v31, %v725_v35  ;;  %1130 = vst.msk [vmem:[#allocation2 + $0x10] sm:$0xff] %vm369_vm2, %v725_v35  ;;  %v727_v39 = vsub.f32 %v707_v32, %v723_v36  ;;  %1128 = vst.msk [vmem:[#allocation2] sm:$0xff] %vm369_vm2, %v723_v36  ;;  %751 = vperm.xlu1 %1769, %v725_v35   ;;  %741 = vperm.xlu0 %1768, %v723_v36   ;;  %v1324_v31 = vld [vmem:[#allocation10] sm:$0xff]  ;;  %v1325_v32 = vld [vmem:[#allocation10 + $0x8] sm:$0xff] }
 0x1e9   : > { %v716_v40 = vpop.xlane.xlu0 %715  ;;  %v1673_v34 = vpack.c.bf16 %v1325_v32, %v1324_v31  ;;  %v800_v36 = vld [vmem:[#allocation4] sm:$0xff] }
 0x1ea   : > { %v724_v41 = vmax.f32 %v708_v37, %v716_v40  ;;  %v731_v4 = vmul.f32 1.442695, %v727_v39  ;;  %v735_v6 = vmul.f32 1.442695, %v729_v38  ;;  %v801_v38 = vld [vmem:[#allocation4 + $0x8] sm:$0xff] }
 0x1ec   : > { %v728_v43 = vsub.f32 %v708_v37, %v724_v41  ;;  %1129 = vst.msk [vmem:[#allocation2 + $0x8] sm:$0xff] %vm369_vm2, %v724_v41  ;;  %746 = vperm.xlu1 %1769, %v724_v41   ;;  %v802_v41 = vld [vmem:[#allocation4 + $0x10] sm:$0xff] }
 0x1ed   : > { %v722_v44 = vpop.xlane.xlu1 %721 }
 0x1ee   : > { %v726_v45 = vmax.f32 %v710_v42, %v722_v44  ;;  %v733_v5 = vmul.f32 1.442695, %v728_v43 }
 0x1f0   : > { %v730_v46 = vsub.f32 %v710_v42, %v726_v45  ;;  %1131 = vst.msk [vmem:[#allocation2 + $0x18] sm:$0xff] %vm369_vm2, %v726_v45  ;;  %756 = vperm.xlu1 %1769, %v726_v45  }
 0x1f2   : > { %v737_v8 = vmul.f32 1.442695, %v730_v46 }
 0x267   : > { %v752_v47 = vpop.permute.xlu1 %751  ;;  %v742_v48 = vpop.permute.xlu0 %741 }
 0x268   : > { %v761_v49 = vsub.f32 %v705_v18, %v752_v47  ;;  %v759_v50 = vsub.f32 %v703_v17, %v742_v48  ;;  %v803_v47 = vld [vmem:[#allocation4 + $0x18] sm:$0xff] }
 0x26a   : > { %v763_v51 = vmul.f32 1.442695, %v759_v50  ;;  %v767_v52 = vmul.f32 1.442695, %v761_v49 }
 0x26b   : > { %v747_v53 = vpop.permute.xlu1 %746 }
 0x26c   : > { %v760_v54 = vsub.f32 %v704_v24, %v747_v53  ;;  %1770 = vpow2.f32 %v763_v51 }
 0x26d   : > { %1772 = vpow2.f32 %v767_v52 }
 0x26e   : > { %v765_v55 = vmul.f32 1.442695, %v760_v54 }
 0x26f   : > { %v757_v56 = vpop.permute.xlu1 %756 }
 0x270   : > { %1774 = vpow2.f32 %v765_v55  ;;  %v762_v57 = vsub.f32 %v706_v28, %v757_v56 }
 0x272   : > { %v769_v58 = vmul.f32 1.442695, %v762_v57 }
 0x274   : > { %1776 = vpow2.f32 %v769_v58 }
 0x275   : > { %1778 = vpow2.f32 %v731_v4 }
 0x276   : > { %v1771_v59 = vpop.eup %1770  ;;  %1780 = vpow2.f32 %v733_v5 }
 0x277   : > { %1644 = vmatmul.mubr.msk.f32.vlgmr.msra.gmra.mrb[2].mxu0 %vm378_vm0, %v1771_v59  ;;  %v779_v60 = vsel %vm378_vm0, %v1771_v59, 0.0  ;;  %v1773_v61 = vpop.eup %1772  ;;  %1782 = vpow2.f32 %v735_v6 }
 0x278   : > { %780 = vadd.xlane.f32.xlu1 %v779_v60  ;;  %1652 = vmatpush3.msra.mxu0 %v2251_v2  ;;  %v785_v1 = vsel %vm378_vm0, %v1773_v61, 0.0  ;;  %1784 = vpow2.f32 %v737_v8 }
 0x279   : > { %1653 = vmatprep.mubr.msk.f32.mxu0 %vm1980_vm1, %v1979_v0  ;;  %1672 = vmatprep.subr.bf16.mxu0 %v1983_v33 }
 0x27a   : > { %v1775_v62 = vpop.eup %1774 }
 0x27b   : > { %1649 = vmatmul.mubr.msk.f32.vlgmr.msra.gmra.mrb[6].mxu1 %vm378_vm0, %v1775_v62  ;;  %v782_v63 = vsel %vm378_vm0, %v1775_v62, 0.0  ;;  %1654 = vmatmul.mubr.msk.f32.vlgmr.msra.gmra.mrb[4].mxu0 %vm378_vm0, %v1773_v61 }
 0x27c   : > { %783 = vadd.xlane.f32.xlu0 %v782_v63  ;;  %786 = vadd.xlane.f32.xlu1 %v785_v1  ;;  %v1984_v63 = vmov 1983009808  }
 0x27d   : > { %1657 = vmatpush3.msra.mxu1 %v2269_v7  ;;  %1658 = vmatprep.mubr.msk.f32.mxu1 %vm1980_vm1, %v1979_v0  ;;  %v1174_v1 = vunpack.c.l.s4 %v1984_v63 }
 0x27e   : > { %v1777_v3 = vpop.eup %1776  ;;  %1669 = vmatprep.mubr.msk.f32.mxu0 %vm1980_vm1, %v1979_v0  ;;  %1674 = vmatpush3.bf16.msra.mxu0 %v1673_v34  ;;  %v1327_v34 = vld [vmem:[#allocation10 + $0x18] sm:$0xff] }
 0x27f   : > { %1659 = vmatmul.mubr.msk.f32.vlgmr.msra.gmra.mrb[8].mxu1 %vm378_vm0, %v1777_v3  ;;  %v788_v2 = vsel %vm378_vm0, %v1777_v3, 0.0  ;;  %v1779_v7 = vpop.eup %1778  ;;  %1675 = vmatprep.subr.bf16.mxu0 %v1983_v33  ;;  %v1176_v3 = vlaneseq  ;;  %v1175_v6 = vunpack.c.0.s8 %v1174_v1  ;;  %v1326_v33 = vld [vmem:[#allocation10 + $0x10] sm:$0xff] }
 0x280   : > { %789 = vadd.xlane.f32.xlu1 %v788_v2  ;;  %v1781_v9 = vpop.eup %1780  ;;  %v775_v12 = vmul.f32 %v1779_v7, %v771_v11 }
 0x281   : > { %v1783_v10 = vpop.eup %1782  ;;  %v776_v17 = vmul.f32 %v1781_v9, %v772_v13  ;;  %v1177_v8 = vshrl.u32 %v1176_v3, 7 }
 0x282   : > { %v1785_v0 = vpop.eup %1784  ;;  %v777_v18 = vmul.f32 %v1783_v10, %v773_v15 }
 0x283   : > { %v778_v24 = vmul.f32 %v1785_v0, %v774_v22  ;;  %v1178_v15 = vsub.s32 %v1175_v6, %v1177_v8 }
 0x291   : > { %806 = vperm.xlu1 %1769, %v1779_v7   ;;  %v1985_v7 = vmov 1934713408  }
 0x292   : > { %811 = vperm.xlu0 %1768, %v1781_v9   ;;  %v1206_v9 = vunpack.c.l.s4 %v1985_v7 }
 0x295   : > { %816 = vperm.xlu1 %1769, %v1783_v10  }
 0x299   : > { %821 = vperm.xlu1 %1769, %v1785_v0  }
 0x305   : > { %v781_v14 = vpop.xlane.xlu1 %780 }
 0x306   : > { %v791_v16 = vadd.f32 %v781_v14, %v775_v12 }
 0x308   : > { %796 = vst.msk [vmem:[#allocation3] sm:$0xff] %vm369_vm2, %v791_v16 }
 0x309   : > { %v784_v19 = vpop.xlane.xlu0 %783  ;;  %v787_v20 = vpop.xlane.xlu1 %786 }
 0x30a   : > { %v792_v21 = vadd.f32 %v784_v19, %v776_v17  ;;  %v793_v23 = vadd.f32 %v787_v20, %v777_v18  ;;  %v1207_v17 = vunpack.c.0.s8 %v1206_v9 }
 0x30c   : > { %797 = vst.msk [vmem:[#allocation3 + $0x8] sm:$0xff] %vm369_vm2, %v792_v21  ;;  %798 = vst.msk [vmem:[#allocation3 + $0x10] sm:$0xff] %vm369_vm2, %v793_v23 }
 0x30d   : > { %v790_v25 = vpop.xlane.xlu1 %789 }
 0x30e   : > { %v794_v26 = vadd.f32 %v790_v25, %v778_v24  ;;  %v1210_v24 = vsub.s32 %v1207_v17, %v1177_v8 }
 0x30f   : > { %v1139_v27 = vld [vmem:[#allocation3] sm:$0xff] }
 0x310   : > { %799 = vst.msk [vmem:[#allocation3 + $0x18] sm:$0xff] %vm369_vm2, %v794_v26  ;;  %1145 = vperm.xlu1 %1769, %v1139_v27  }
 0x311   : > { %v807_v35 = vpop.permute.xlu1 %806  ;;  %v812_v39 = vpop.permute.xlu0 %811 }
 0x312   : > { %v824_v40 = vmul.f32 %v807_v35, %v800_v36  ;;  %v825_v45 = vmul.f32 %v812_v39, %v801_v38  ;;  %v1676_v35 = vpack.c.bf16 %v1327_v34, %v1326_v33 }
 0x313   : > { %v1140_v28 = vld [vmem:[#allocation3 + $0x8] sm:$0xff]  ;;  %v1141_v29 = vld [vmem:[#allocation3 + $0x10] sm:$0xff] }
 0x314   : > { %1150 = vperm.xlu0 %1768, %v1140_v28   ;;  %1155 = vperm.xlu1 %1769, %v1141_v29  }
 0x315   : > { %v817_v37 = vpop.permute.xlu1 %816  ;;  %1677 = vmatpush3.bf16.msra.mxu0 %v1676_v35 }
 0x316   : > { %v826_v46 = vmul.f32 %v817_v37, %v802_v41 }
 0x317   : > { %v1142_v30 = vld [vmem:[#allocation3 + $0x18] sm:$0xff] }
 0x318   : > { %1160 = vperm.xlu0 %1768, %v1142_v30  }
 0x319   : > { %v822_v48 = vpop.permute.xlu1 %821 }
 0x31a   : > { %v827_v55 = vmul.f32 %v822_v48, %v803_v47 }
 0x34a   : > { %v897_v42 = vpop.f32.mrb[2].mxu0 }
 0x34b   : > { %v1120_v43 = vadd.f32 %v897_v42, %v824_v40  ;;  %v1645_v44 = vpop.f32.mrb[3].mxu0 }
 0x34d   : > { %1124 = vst.msk [vmem:[#allocation4] sm:$0xff] %vm378_vm0, %v1120_v43 }
 0x34e   : > { %v970_v49 = vpop.f32.mrb[6].mxu1  ;;  %v1043_v51 = vpop.f32.mrb[4].mxu0 }
 0x34f   : > { %v1121_v50 = vadd.f32 %v970_v49, %v825_v45  ;;  %v1650_v52 = vpop.f32.mrb[7].mxu1  ;;  %v1122_v53 = vadd.f32 %v1043_v51, %v826_v46  ;;  %v1655_v54 = vpop.f32.mrb[5].mxu0 }
 0x351   : > { %1125 = vst.msk [vmem:[#allocation4 + $0x8] sm:$0xff] %vm378_vm0, %v1121_v50  ;;  %1126 = vst.msk [vmem:[#allocation4 + $0x10] sm:$0xff] %vm378_vm0, %v1122_v53 }
 0x352   : > { %v1116_v56 = vpop.f32.mrb[8].mxu1 }
 0x353   : > { %v1123_v57 = vadd.f32 %v1116_v56, %v827_v55  ;;  %v1660_v58 = vpop.f32.mrb[9].mxu1 }
 0x354   : > { %v1135_v11 = vld [vmem:[#allocation4] sm:$0xff] }
 0x355   : > { %1127 = vst.msk [vmem:[#allocation4 + $0x18] sm:$0xff] %vm378_vm0, %v1123_v57 }
 0x358   : > { %v1137_v5 = vld [vmem:[#allocation4 + $0x10] sm:$0xff]  ;;  %v1136_v14 = vld [vmem:[#allocation4 + $0x8] sm:$0xff] }
 0x35c   : > { %v1138_v16 = vld [vmem:[#allocation4 + $0x18] sm:$0xff] }
 0x38f   : > { %v1146_v59 = vpop.permute.xlu1 %1145 }
 0x390   : > { %1786 = vrcp.f32 %v1146_v59 }
 0x393   : > { %v1151_v60 = vpop.permute.xlu0 %1150  ;;  %v1156_v61 = vpop.permute.xlu1 %1155 }
 0x394   : > { %1788 = vrcp.f32 %v1156_v61 }
 0x395   : > { %1790 = vrcp.f32 %v1151_v60 }
 0x397   : > { %v1161_v62 = vpop.permute.xlu0 %1160 }
 0x398   : > { %1792 = vrcp.f32 %v1161_v62 }
 0x39a   : > { %v1787_v2 = vpop.eup %1786 }
 0x39b   : > { %v1164_v12 = vmul.f32 %v1787_v2, %v1135_v11  ;;  %v1592_v2 = vld [vmem:[%s2412_s4] ss:$0 sm:$0xff] }
 0x39e   : > { %v1789_v4 = vpop.eup %1788 }
 0x39f   : > { %v1168_v10 = vmul.f32 %v1789_v4, %v1137_v5  ;;  %v1791_v0 = vpop.eup %1790 }
 0x3a0   : > { %v1166_v18 = vmul.f32 %v1791_v0, %v1136_v14 }
 0x3a1   : > { %v1171_v19 = vcombine.low %v1164_v12, %v1168_v10  ;;  %v1172_v20 = vcombine.high %v1164_v12, %v1168_v10 }
 0x3a2   : > { %v1793_v13 = vpop.eup %1792 }
 0x3a3   : > { %v1170_v21 = vmul.f32 %v1793_v13, %v1138_v16  ;;  %v1179_v25 = vrot.slane %v1171_v19, %v1178_v15  ;;  %v1186_v26 = vrot.slane %v1172_v20, %v1178_v15 }
 0x3a5   : > { %v1187_v22 = vcombine.low %v1166_v18, %v1170_v21  ;;  %v1188_v23 = vcombine.high %v1166_v18, %v1170_v21 }
 0x3a7   : > { %v1195_v27 = vrot.slane %v1187_v22, %v1178_v15  ;;  %v1202_v28 = vrot.slane %v1188_v23, %v1178_v15 }
 0x3a9   : > { %v1203_v29 = vcombine.low %v1179_v25, %v1195_v27  ;;  %v1204_v30 = vcombine.high %v1179_v25, %v1195_v27  ;;  %v1219_v31 = vcombine.low %v1186_v26, %v1202_v28  ;;  %v1220_v32 = vcombine.high %v1186_v26, %v1202_v28 }
 0x3ab   : > { %v1211_v36 = vrot.slane %v1203_v29, %v1210_v24  ;;  %v1218_v37 = vrot.slane %v1204_v30, %v1210_v24  ;;  %v1227_v38 = vrot.slane %v1219_v31, %v1210_v24  ;;  %v1234_v39 = vrot.slane %v1220_v32, %v1210_v24 }
 0x3ad   : > { %v1239_v40 = vcombine.low %v1211_v36, %v1218_v37  ;;  %v1590_v41 = vcombine.high %v1211_v36, %v1218_v37  ;;  %v1255_v42 = vcombine.low %v1227_v38, %v1234_v39  ;;  %v1591_v43 = vcombine.high %v1227_v38, %v1234_v39 }
 0x3af   : > { %v1246_v44 = vrot.slane %v1239_v40, %v1178_v15  ;;  %v1254_v45 = vrot.slane %v1590_v41, %v1178_v15  ;;  %v1262_v46 = vrot.slane %v1255_v42, %v1178_v15  ;;  %v1270_v47 = vrot.slane %v1591_v43, %v1178_v15 }
 0x3b1   : > { %v1272_v48 = vcombine.high %v1246_v44, %v1254_v45  ;;  %v1288_v49 = vcombine.high %v1262_v46, %v1270_v47  ;;  %v1271_v50 = vcombine.low %v1246_v44, %v1254_v45  ;;  %v1287_v51 = vcombine.low %v1262_v46, %v1270_v47 }
 0x3b3   : > { %v1286_v52 = vrot.slane %v1272_v48, %v1210_v24  ;;  %v1302_v53 = vrot.slane %v1288_v49, %v1210_v24  ;;  %v1279_v54 = vrot.slane %v1271_v50, %v1210_v24  ;;  %v1295_v55 = vrot.slane %v1287_v51, %v1210_v24 }
 0x3b5   : > { %v1305_v56 = vcombine.low %v1286_v52, %v1302_v53  ;;  %v1304_v57 = vcombine.high %v1279_v54, %v1295_v55  ;;  %v1303_v58 = vcombine.low %v1279_v54, %v1295_v55  ;;  %v1306_v59 = vcombine.high %v1286_v52, %v1302_v53 }
 0x3b7   : > { %1312 = vrot.lane.b32.xlu0 %v1305_v56, %s1986_s8  ;;  %1308 = vrot.lane.b32.xlu1 %v1304_v57, %s1987_s11 }
 0x3bb   : > { %1316 = vrot.lane.b32.xlu1 %v1306_v59, %s1988_s15 }
 0x429   : > { %v1309_v60 = vpop.permute.xlu1 %1308  ;;  %v1313_v61 = vpop.permute.xlu0 %1312 }
 0x42a   : > { %v1319_v62 = vsel %vm378_vm0, %v1303_v58, %v1309_v60 }
 0x42b   : > { %v1321_v1 = vsel %vm1320_vm5, %v1319_v62, %v1313_v61 }
 0x42d   : > { %v1317_v63 = vpop.permute.xlu1 %1316 }
 0x42e   : > { %v1323_v3 = vsel %vm1322_vm6, %v1321_v1, %v1317_v63 }
 0x42f   : > { %1670 = vmatmul.mubr.msk.f32.vlgmr.msra.gmra.mrb[6].mxu0 %vm1335_vm7, %v1323_v3 }
 0x502   : > { %v1405_v4 = vpop.f32.mrb[6].mxu0 }
 0x503   : > { %v1406_v5 = vadd.f32 %v1592_v2, %v1405_v4  ;;  %v1671_v6 = vpop.f32.mrb[7].mxu0 }
 0x505   : > { %1409 = vst.msk [vmem:[%s352_s13] sm:$0xff] %vm1335_vm7, %v1406_v5 }
 0x506   : > { %1895 = shalt.err (!%p1892_p12)
}
 0x507   : > { %s1896_s17 = scalar_lea.hbm %s2359_s28, 128  ;;  %s1900_s8 = scalar_lea.hbm %s2413_s5, 256 }
 0x508   : > { %p1897_p11 = scmp.ne.s32.totalorder %s2359_s28, %s1896_s17  ;;  %p1901_p13 = scmp.lt.u32.totalorder %s2359_s28, %s2413_s5 }
 0x509   : > { %p1902_p0 = scmp.lt.u32.totalorder %s1900_s8, %s1896_s17  ;;  %p1904_p9 = scmp.lt.u32.totalorder %s1896_s17, %s2359_s28 }
 0x50a   : > { %p1898_p3 = pnand %p1897_p11, %p2115_p10 }
 0x50b   : > { %p1903_p5 = por %p1902_p0, %p1901_p13 }
 0x50c   : > { %p1899_p6 = pneg %p1898_p3 }
 0x50d   : > { %p1905_p1 = por %p1904_p9, %p1903_p5 }
 0x50f   : > { %p1906_p2 = pnand %p1905_p1, %p1899_p6 }
 0x511   : > { %1909 = shalt.err (!%p1906_p2)
}
 0x512   : > { %1686 = dma.vmem_to_hbm [thread:$0]  (%p2115_p10), %s2361_s30, 128, %s2359_s28, %s1411_s10  }
 0x513 PF: > { %s1437_s7 = sand.u32 1, %s1952_s18   ;;  %p2445_p7 = scmp.ne.s32.totalorder %s2427_s27, 0 }
 0x514   : > { %p2446_p4 = scmp.ge.s32.totalorder %s1972_s23, 2  ;;  %s1438_s16 = scalar_lea.sflag [#allocation7], %s1437_s7 }
 0x516   : > { %p1700_p8 = pnand %p2446_p4, %p2445_p7 }
 0x518   : > { %1947 = dma.done.wait (!%p1700_p8), %s1438_s16, 128  }
 0x519   : > { %1949 = vsyncadd (!%p1700_p8), %s1438_s16, 4294967168  ;;  %s24_s23 = sadd.s32 1, %s1972_s23   ;;  %s2447_s21 = sld [smem:[#allocation16_spill]] }
 0x51a   : > { %p21_p12 = scmp.ge.s32.totalorder %s24_s23, 4   ;;  %s2448_s22 = sld [smem:[#allocation17_spill]] }
 0x51b   : > { %s2449_s18 = smov %s1956_s19  ;;  %s2450_s19 = smov %s1960_s20 }
 0x51c   : > { %s2451_s20 = smov %s2124_s12  ;;  %23 = sbr.rel (!%p21_p12) target bundleno = 11 (0xb), region = 113 }
 0x523   :  { %1443 = vsyncpa [#allocation6], 1 }
 0x524   :  { %1445 = vsyncpa [#allocation6 + $0x1], 1 }
 0x525   :  { %1446 = vsyncpa [#allocation9], 1 }
 0x526   :  { %1448 = vsyncpa [#allocation9 + $0x1], 1 }
 0x527   :  { %1449 = vsyncpa [#allocation7], 1 }
 0x528   :  { %1451 = vsyncpa [#allocation7 + $0x1], 1 }

</bundles_post_ra>
